<compile_context>
chip_gen: v5e
topology: v5e:2x2
jax: 0.10.0
libtpu: 0.0.40
codegen_flags: <defaults>
</compile_context>

<pallas_src>
import functools

import jax
import jax.numpy as jnp
from jax.experimental import pallas as pl
from jax.experimental.pallas import tpu as pltpu

EPS = 1e-5
MOMENTUM = 0.9


def _batchnorm_kernel(x_ref, gamma_ref, beta_ref, mm_ref, mv_ref,
                      y_ref, new_mm_ref, new_mv_ref):
    # x_ref: (N, TC, HW) f32 ; gamma/beta/mm/mv refs: (1, TC, 1) f32
    x = x_ref[...]
    n, _, hw = x.shape
    inv_l = 1.0 / (n * hw)

    # Two-pass (numerically stable) per-channel mean / variance.
    mean = jnp.sum(x, axis=(0, 2), keepdims=True) * inv_l          # (1, TC, 1)
    diff = x - mean
    var = jnp.sum(diff * diff, axis=(0, 2), keepdims=True) * inv_l  # (1, TC, 1)

    # Fused normalize + affine: single FMA-shaped pass over x.
    inv_std = jax.lax.rsqrt(var + EPS)                              # EUP rsqrt
    scale = gamma_ref[...] * inv_std                                # (1, TC, 1)
    bias = beta_ref[...] - mean * scale                             # (1, TC, 1)
    y_ref[...] = x * scale + bias

    new_mm_ref[...] = MOMENTUM * mm_ref[...] + (1.0 - MOMENTUM) * mean
    new_mv_ref[...] = MOMENTUM * mv_ref[...] + (1.0 - MOMENTUM) * var


def _round_up(a, m):
    return (a + m - 1) // m * m


@functools.partial(jax.jit, static_argnames=())
def batch_norm_pallas(x, gamma, beta, moving_mean, moving_var):
    """x: (N, C, H, W) f32; gamma/beta/moving_*: (1, C, 1, 1) f32.

    Returns (Y, new_moving_mean, new_moving_var), same shapes as the
    PyTorch module's outputs/state.
    """
    N, C, H, W = x.shape
    HW = H * W

    # Free layout change: NCHW is contiguous as (N, C, H*W).
    x3 = x.reshape(N, C, HW)
    g3 = gamma.reshape(1, C, 1)
    b3 = beta.reshape(1, C, 1)
    mm3 = moving_mean.reshape(1, C, 1)
    mv3 = moving_var.reshape(1, C, 1)

    # Channel tile: multiple of 8 sublanes, sized so one (N, TC, HW) f32 block
    # stays ~<=2 MiB (double-buffered in + out ~= 4x block -> safely under the
    # 16 MiB v5e scoped-VMEM default; also fine on v6e/v7x).
    bytes_per_c = N * HW * 4
    c8 = _round_up(C, 8)
    tc = max(8, min(c8, ((2 * 1024 * 1024) // max(bytes_per_c, 1)) // 8 * 8))
    # If even TC=8 overflows VMEM (enormous N*H*W), an L-tiled accumulator
    # formulation would be needed; not required at these sizes.
    Cp = _round_up(C, tc)

    pad_c = Cp - C
    if pad_c:
        x3 = jnp.pad(x3, ((0, 0), (0, pad_c), (0, 0)))
        g3 = jnp.pad(g3, ((0, 0), (0, pad_c), (0, 0)))
        b3 = jnp.pad(b3, ((0, 0), (0, pad_c), (0, 0)))
        mm3 = jnp.pad(mm3, ((0, 0), (0, pad_c), (0, 0)))
        mv3 = jnp.pad(mv3, ((0, 0), (0, pad_c), (0, 0)))

    x_spec = pl.BlockSpec((N, tc, HW), lambda i: (0, i, 0))
    s_spec = pl.BlockSpec((1, tc, 1), lambda i: (0, i, 0))

    y3, new_mm3, new_mv3 = pl.pallas_call(
        _batchnorm_kernel,
        grid=(Cp // tc,),
        in_specs=[x_spec, s_spec, s_spec, s_spec, s_spec],
        out_specs=(x_spec, s_spec, s_spec),
        out_shape=(
            jax.ShapeDtypeStruct((N, Cp, HW), x.dtype),
            jax.ShapeDtypeStruct((1, Cp, 1), jnp.float32),
            jax.ShapeDtypeStruct((1, Cp, 1), jnp.float32),
        ),
        compiler_params=pltpu.CompilerParams(
            dimension_semantics=("parallel",)),
    )(x3, g3, b3, mm3, mv3)

    y = y3[:, :C, :].reshape(N, C, H, W)
    new_mm = new_mm3[:, :C, :].reshape(1, C, 1, 1)
    new_mv = new_mv3[:, :C, :].reshape(1, C, 1, 1)
    return y, new_mm, new_mv


def batch_norm_ref(x, gamma, beta, moving_mean, moving_var):
    mean = jnp.mean(x, axis=(0, 2, 3), keepdims=True)
    var = jnp.mean((x - mean) ** 2, axis=(0, 2, 3), keepdims=True)
    x_hat = (x - mean) / jnp.sqrt(var + EPS)
    y = gamma * x_hat + beta
    new_mm = MOMENTUM * moving_mean + (1.0 - MOMENTUM) * mean
    new_mv = MOMENTUM * moving_var + (1.0 - MOMENTUM) * var
    return y, new_mm, new_mv


if __name__ == "__main__":
    key = jax.random.PRNGKey(0)
    N, C, H, W = 2, 4, 16, 16

    x = jax.random.normal(key, (N, C, H, W), dtype=jnp.float32)

    # BatchNorm.__init__(num_features=C, num_dims=4): deterministic init
    gamma = jnp.ones((1, C, 1, 1), dtype=jnp.float32)
    beta = jnp.zeros((1, C, 1, 1), dtype=jnp.float32)
    moving_mean = jnp.zeros((1, C, 1, 1), dtype=jnp.float32)
    moving_var = jnp.ones((1, C, 1, 1), dtype=jnp.float32)

    y, new_mm, new_mv = batch_norm_pallas(x, gamma, beta, moving_mean, moving_var)
    jax.block_until_ready((y, new_mm, new_mv))

    y_r, mm_r, mv_r = batch_norm_ref(x, gamma, beta, moving_mean, moving_var)
    assert jnp.allclose(y, y_r, atol=1e-5, rtol=1e-5)
    assert jnp.allclose(new_mm, mm_r, atol=1e-6, rtol=1e-6)
    assert jnp.allclose(new_mv, mv_r, atol=1e-6, rtol=1e-6)

    print("KERNEL_OK")
</pallas_src>

<mosaic_0001>
module attributes {stable_mosaic.version = 11 : i64} {
  func.func @_batchnorm_kernel(%arg0: i32, %arg1: memref<2x8x256xf32, #tpu.memory_space<vmem>>, %arg2: memref<1x8x1xf32, #tpu.memory_space<vmem>>, %arg3: memref<1x8x1xf32, #tpu.memory_space<vmem>>, %arg4: memref<1x8x1xf32, #tpu.memory_space<vmem>>, %arg5: memref<1x8x1xf32, #tpu.memory_space<vmem>>, %arg6: memref<2x8x256xf32, #tpu.memory_space<vmem>>, %arg7: memref<1x8x1xf32, #tpu.memory_space<vmem>>, %arg8: memref<1x8x1xf32, #tpu.memory_space<vmem>>) attributes {dimension_semantics = [#tpu.dimension_semantics<parallel>], iteration_bounds = array<i64: 1>, scalar_prefetch = 0 : i64, scratch_operands = 0 : i64, tpu.core_type = #tpu.core_type<tc>, window_params = [{transform_indices = @transform_0, window_bounds = array<i64: 2, 8, 256>}, {transform_indices = @transform_1, window_bounds = array<i64: 1, 8, 1>}, {transform_indices = @transform_2, window_bounds = array<i64: 1, 8, 1>}, {transform_indices = @transform_3, window_bounds = array<i64: 1, 8, 1>}, {transform_indices = @transform_4, window_bounds = array<i64: 1, 8, 1>}, {transform_indices = @transform_5, window_bounds = array<i64: 2, 8, 256>}, {transform_indices = @transform_6, window_bounds = array<i64: 1, 8, 1>}, {transform_indices = @transform_7, window_bounds = array<i64: 1, 8, 1>}]} {
    %c0 = arith.constant 0 : index
    %c0_0 = arith.constant 0 : index
    %c0_1 = arith.constant 0 : index
    %0 = vector.load %arg1[%c0, %c0_0, %c0_1] : memref<2x8x256xf32, #tpu.memory_space<vmem>>, vector<2x8x256xf32>
    %cst = arith.constant dense<0.000000e+00> : vector<8xf32>
    %1 = vector.multi_reduction <add>, %0, %cst [0, 2] : vector<2x8x256xf32> to vector<8xf32>
    %2 = vector.shape_cast %1 : vector<8xf32> to vector<1x8x1xf32>
    %cst_2 = arith.constant 0.001953125 : f32
    %3 = vector.broadcast %cst_2 : f32 to vector<1x8x1xf32>
    %4 = arith.mulf %2, %3 : vector<1x8x1xf32>
    %5 = vector.broadcast %4 : vector<1x8x1xf32> to vector<2x8x256xf32>
    %6 = arith.subf %0, %5 : vector<2x8x256xf32>
    %7 = arith.mulf %6, %6 : vector<2x8x256xf32>
    %cst_3 = arith.constant dense<0.000000e+00> : vector<8xf32>
    %8 = vector.multi_reduction <add>, %7, %cst_3 [0, 2] : vector<2x8x256xf32> to vector<8xf32>
    %9 = vector.shape_cast %8 : vector<8xf32> to vector<1x8x1xf32>
    %cst_4 = arith.constant 0.001953125 : f32
    %10 = vector.broadcast %cst_4 : f32 to vector<1x8x1xf32>
    %11 = arith.mulf %9, %10 : vector<1x8x1xf32>
    %cst_5 = arith.constant 9.99999974E-6 : f32
    %12 = vector.broadcast %cst_5 : f32 to vector<1x8x1xf32>
    %13 = arith.addf %11, %12 : vector<1x8x1xf32>
    %14 = math.rsqrt %13 : vector<1x8x1xf32>
    %c0_6 = arith.constant 0 : index
    %c0_7 = arith.constant 0 : index
    %c0_8 = arith.constant 0 : index
    %15 = vector.load %arg2[%c0_6, %c0_7, %c0_8] : memref<1x8x1xf32, #tpu.memory_space<vmem>>, vector<1x8x1xf32>
    %16 = arith.mulf %15, %14 : vector<1x8x1xf32>
    %c0_9 = arith.constant 0 : index
    %c0_10 = arith.constant 0 : index
    %c0_11 = arith.constant 0 : index
    %17 = vector.load %arg3[%c0_9, %c0_10, %c0_11] : memref<1x8x1xf32, #tpu.memory_space<vmem>>, vector<1x8x1xf32>
    %18 = arith.mulf %4, %16 : vector<1x8x1xf32>
    %19 = arith.subf %17, %18 : vector<1x8x1xf32>
    %20 = vector.broadcast %16 : vector<1x8x1xf32> to vector<2x8x256xf32>
    %21 = arith.mulf %0, %20 : vector<2x8x256xf32>
    %22 = vector.broadcast %19 : vector<1x8x1xf32> to vector<2x8x256xf32>
    %23 = arith.addf %21, %22 : vector<2x8x256xf32>
    %c0_12 = arith.constant 0 : index
    %c0_13 = arith.constant 0 : index
    %c0_14 = arith.constant 0 : index
    %24 = vector.load %arg6[%c0_12, %c0_13, %c0_14] : memref<2x8x256xf32, #tpu.memory_space<vmem>>, vector<2x8x256xf32>
    tpu.vector_store %arg6[%c0_12, %c0_13, %c0_14], %23 {strides = array<i32>} : memref<2x8x256xf32, #tpu.memory_space<vmem>>, vector<2x8x256xf32>,
    %c0_15 = arith.constant 0 : index
    %c0_16 = arith.constant 0 : index
    %c0_17 = arith.constant 0 : index
    %25 = vector.load %arg4[%c0_15, %c0_16, %c0_17] : memref<1x8x1xf32, #tpu.memory_space<vmem>>, vector<1x8x1xf32>
    %cst_18 = arith.constant 0.899999976 : f32
    %26 = vector.broadcast %cst_18 : f32 to vector<1x8x1xf32>
    %27 = arith.mulf %26, %25 : vector<1x8x1xf32>
    %cst_19 = arith.constant 1.000000e-01 : f32
    %28 = vector.broadcast %cst_19 : f32 to vector<1x8x1xf32>
    %29 = arith.mulf %28, %4 : vector<1x8x1xf32>
    %30 = arith.addf %27, %29 : vector<1x8x1xf32>
    %c0_20 = arith.constant 0 : index
    %c0_21 = arith.constant 0 : index
    %c0_22 = arith.constant 0 : index
    %31 = vector.load %arg7[%c0_20, %c0_21, %c0_22] : memref<1x8x1xf32, #tpu.memory_space<vmem>>, vector<1x8x1xf32>
    tpu.vector_store %arg7[%c0_20, %c0_21, %c0_22], %30 {strides = array<i32>} : memref<1x8x1xf32, #tpu.memory_space<vmem>>, vector<1x8x1xf32>,
    %c0_23 = arith.constant 0 : index
    %c0_24 = arith.constant 0 : index
    %c0_25 = arith.constant 0 : index
    %32 = vector.load %arg5[%c0_23, %c0_24, %c0_25] : memref<1x8x1xf32, #tpu.memory_space<vmem>>, vector<1x8x1xf32>
    %cst_26 = arith.constant 0.899999976 : f32
    %33 = vector.broadcast %cst_26 : f32 to vector<1x8x1xf32>
    %34 = arith.mulf %33, %32 : vector<1x8x1xf32>
    %cst_27 = arith.constant 1.000000e-01 : f32
    %35 = vector.broadcast %cst_27 : f32 to vector<1x8x1xf32>
    %36 = arith.mulf %35, %11 : vector<1x8x1xf32>
    %37 = arith.addf %34, %36 : vector<1x8x1xf32>
    %c0_28 = arith.constant 0 : index
    %c0_29 = arith.constant 0 : index
    %c0_30 = arith.constant 0 : index
    %38 = vector.load %arg8[%c0_28, %c0_29, %c0_30] : memref<1x8x1xf32, #tpu.memory_space<vmem>>, vector<1x8x1xf32>
    tpu.vector_store %arg8[%c0_28, %c0_29, %c0_30], %37 {strides = array<i32>} : memref<1x8x1xf32, #tpu.memory_space<vmem>>, vector<1x8x1xf32>,
    return
  }
  func.func @transform_0(%arg0: i32) -> (i32, i32, i32) {
    %c0_i32 = arith.constant 0 : i32
    %c0_i32_0 = arith.constant 0 : i32
    %c0_i32_1 = arith.constant 0 : i32
    return %c0_i32, %arg0, %c0_i32_0 : i32, i32, i32
  }
  func.func @transform_1(%arg0: i32) -> (i32, i32, i32) {
    %c0_i32 = arith.constant 0 : i32
    %c0_i32_0 = arith.constant 0 : i32
    %c0_i32_1 = arith.constant 0 : i32
    return %c0_i32, %arg0, %c0_i32_0 : i32, i32, i32
  }
  func.func @transform_2(%arg0: i32) -> (i32, i32, i32) {
    %c0_i32 = arith.constant 0 : i32
    %c0_i32_0 = arith.constant 0 : i32
    %c0_i32_1 = arith.constant 0 : i32
    return %c0_i32, %arg0, %c0_i32_0 : i32, i32, i32
  }
  func.func @transform_3(%arg0: i32) -> (i32, i32, i32) {
    %c0_i32 = arith.constant 0 : i32
    %c0_i32_0 = arith.constant 0 : i32
    %c0_i32_1 = arith.constant 0 : i32
    return %c0_i32, %arg0, %c0_i32_0 : i32, i32, i32
  }
  func.func @transform_4(%arg0: i32) -> (i32, i32, i32) {
    %c0_i32 = arith.constant 0 : i32
    %c0_i32_0 = arith.constant 0 : i32
    %c0_i32_1 = arith.constant 0 : i32
    return %c0_i32, %arg0, %c0_i32_0 : i32, i32, i32
  }
  func.func @transform_5(%arg0: i32) -> (i32, i32, i32) {
    %c0_i32 = arith.constant 0 : i32
    %c0_i32_0 = arith.constant 0 : i32
    %c0_i32_1 = arith.constant 0 : i32
    return %c0_i32, %arg0, %c0_i32_0 : i32, i32, i32
  }
  func.func @transform_6(%arg0: i32) -> (i32, i32, i32) {
    %c0_i32 = arith.constant 0 : i32
    %c0_i32_0 = arith.constant 0 : i32
    %c0_i32_1 = arith.constant 0 : i32
    return %c0_i32, %arg0, %c0_i32_0 : i32, i32, i32
  }
  func.func @transform_7(%arg0: i32) -> (i32, i32, i32) {
    %c0_i32 = arith.constant 0 : i32
    %c0_i32_0 = arith.constant 0 : i32
    %c0_i32_1 = arith.constant 0 : i32
    return %c0_i32, %arg0, %c0_i32_0 : i32, i32, i32
  }
}

</mosaic_0001>

<bundles_post_ra>
// kernel: batch_norm_pallas.1
= control target key start
LH: loop header
LB: loop body
LE: loop exit
PB: predicated region body
PF: predicated region fallthrough
CT: control target
= control target key end

     0   :  { %vm89_vm0 = vcmask 7168   ;;  %v113_v24 = vmov 0   ;;  %s218_s0 = inlined_call_operand.vmem [shape: f32[2,8,256], index: 0, kind: input, shape index: {}]   ;;  %s219_s3 = inlined_call_operand.vmem [shape: f32[1,8,1], index: 3, kind: input, shape index: {}]   ;;  %s220_s6 = inlined_call_operand.vmem [shape: f32[1,8,1], index: 6, kind: output, shape index: {1}]   ;;  %s221_s4 = inlined_call_operand.vmem [shape: f32[1,8,1], index: 4, kind: input, shape index: {}]   ;;  %s222_s7 = inlined_call_operand.vmem [shape: f32[1,8,1], index: 7, kind: output, shape index: {2}]   ;;  %s223_s1 = inlined_call_operand.vmem [shape: f32[1,8,1], index: 1, kind: input, shape index: {}]   ;;  %s224_s2 = inlined_call_operand.vmem [shape: f32[1,8,1], index: 2, kind: input, shape index: {}]   ;;  %s225_s5 = inlined_call_operand.vmem [shape: f32[2,8,256], index: 5, kind: output, shape index: {0}]  }
   0x1   :  { %v157_v0 = vld [vmem:[%s218_s0] sm:$0xff]  ;;  %v162_v1 = vld [vmem:[%s218_s0 + $0x8] sm:$0xff]  ;;  %v167_v2 = vld [vmem:[%s218_s0 + $0x10] sm:$0xff]  ;;  %109 = vset.pattern.permute.xlu1 %v113_v24  ;;  %110 = vset.pattern.permute.xlu0 %v113_v24 }
   0x2   :  { %v27_v3 = vadd.f32 %v162_v1, %v157_v0  ;;  %v174_v4 = vld [vmem:[%s218_s0 + $0x18] sm:$0xff]  ;;  %v85_v7 = vld [vmem:[%s219_s3] sm:$0xff] }
   0x3   :  { %v86_v10 = vmul.f32 0.9, %v85_v7  ;;  %v91_v25 = vld [vmem:[%s221_s4] sm:$0xff] }
   0x4   :  { %v28_v5 = vadd.f32 %v27_v3, %v167_v2  ;;  %v92_v27 = vmul.f32 0.9, %v91_v25  ;;  %v58_v38 = vld [vmem:[%s223_s1] sm:$0xff] }
   0x5   :  { %v60_v42 = vld [vmem:[%s224_s2] sm:$0xff] }
   0x6   :  { %v29_v6 = vadd.f32 %v28_v5, %v174_v4 }
   0x8   :  { %30 = vadd.xlane.f32.xlu0 %v29_v6 }
  0x7b   :  { %v31_v8 = vpop.xlane.xlu0 %30 }
  0x7c   :  { %v32_v9 = vmul.f32 0.001953125, %v31_v8 }
  0x7e   :  { %v87_v11 = vmul.f32 0.1, %v32_v9  ;;  %v33_v12 = vsub.f32 %v157_v0, %v32_v9  ;;  %v34_v13 = vsub.f32 %v162_v1, %v32_v9  ;;  %v35_v14 = vsub.f32 %v167_v2, %v32_v9 }
  0x7f   :  { %v36_v15 = vsub.f32 %v174_v4, %v32_v9 }
  0x80   :  { %v37_v16 = vmul.f32 %v33_v12, %v33_v12  ;;  %v38_v17 = vmul.f32 %v34_v13, %v34_v13  ;;  %v88_v18 = vadd.f32 %v87_v11, %v86_v10  ;;  %v39_v19 = vmul.f32 %v35_v14, %v35_v14 }
  0x81   :  { %v40_v21 = vmul.f32 %v36_v15, %v36_v15 }
  0x82   :  { %v41_v20 = vadd.f32 %v38_v17, %v37_v16  ;;  %90 = vst.msk [vmem:[%s220_s6] sm:$0xff] %vm89_vm0, %v88_v18 }
  0x84   :  { %v42_v22 = vadd.f32 %v41_v20, %v39_v19 }
  0x86   :  { %v43_v23 = vadd.f32 %v42_v22, %v40_v21 }
  0x88   :  { %44 = vadd.xlane.f32.xlu0 %v43_v23 }
  0xfb   :  { %v45_v26 = vpop.xlane.xlu0 %44 }
  0xfc   :  { %v46_v28 = vmul.f32 0.001953125, %v45_v26 }
  0xfe   :  { %v47_v29 = vadd.f32 1e-05, %v46_v28  ;;  %v93_v30 = vmul.f32 0.1, %v46_v28 }
 0x100   :  { %111 = vrsqrt.f32 %v47_v29  ;;  %v94_v31 = vadd.f32 %v93_v30, %v92_v27  ;;  %vm54_vm2 = vweird.f32 %v47_v29 }
 0x102   :  { %95 = vst.msk [vmem:[%s222_s7] sm:$0xff] %vm89_vm0, %v94_v31 }
 0x106   :  { %v112_v32 = vpop.eup %111 }
 0x107   :  { %v49_v33 = vmul.f32 %v112_v32, %v47_v29  ;;  %vm55_vm1 = vweird.f32 %v112_v32 }
 0x108   :  { %vm56_vm3 = vmor %vm54_vm2, %vm55_vm1 }
 0x109   :  { %v50_v34 = vmul.f32 %v112_v32, %v49_v33 }
 0x10b   :  { %v51_v35 = vmul.f32 0.5, %v50_v34 }
 0x10d   :  { %v52_v36 = vsub.f32 1.5, %v51_v35 }
 0x10f   :  { %v53_v37 = vmul.f32 %v112_v32, %v52_v36 }
 0x111   :  { %v57_v39 = vsel %vm56_vm3, %v112_v32, %v53_v37 }
 0x112   :  { %v59_v40 = vmul.f32 %v58_v38, %v57_v39 }
 0x114   :  { %65 = vperm.xlu1 %109, %v59_v40   ;;  %v61_v41 = vmul.f32 %v59_v40, %v32_v9 }
 0x116   :  { %v62_v43 = vsub.f32 %v60_v42, %v61_v41 }
 0x11c   :  { %74 = vperm.xlu1 %109, %v62_v43  }
 0x186   :  { %v66_v44 = vpop.permute.xlu1 %65 }
 0x187   :  { %v68_v45 = vmul.f32 %v66_v44, %v157_v0  ;;  %v69_v46 = vmul.f32 %v66_v44, %v162_v1  ;;  %v70_v47 = vmul.f32 %v66_v44, %v167_v2  ;;  %v71_v48 = vmul.f32 %v66_v44, %v174_v4 }
 0x18e   :  { %v75_v49 = vpop.permute.xlu1 %74 }
 0x18f   :  { %v77_v50 = vadd.f32 %v75_v49, %v68_v45  ;;  %v78_v51 = vadd.f32 %v75_v49, %v69_v46  ;;  %v79_v52 = vadd.f32 %v75_v49, %v70_v47  ;;  %v80_v53 = vadd.f32 %v75_v49, %v71_v48 }
 0x191   :  { %81 = vst [vmem:[%s225_s5] sm:$0xff] %v77_v50 }
 0x192   :  { %82 = vst [vmem:[%s225_s5 + $0x8] sm:$0xff] %v78_v51 }
 0x193   :  { %83 = vst [vmem:[%s225_s5 + $0x10] sm:$0xff] %v79_v52 }
 0x194   :  { %84 = vst [vmem:[%s225_s5 + $0x18] sm:$0xff] %v80_v53 }

</bundles_post_ra>
